<compile_context>
chip_gen: v5e
topology: v5e:2x2
jax: 0.10.0
libtpu: 0.0.40
codegen_flags: <defaults>
</compile_context>

<pallas_src>
import jax
import jax.numpy as jnp
import numpy as np
from jax.experimental import pallas as pl
from jax.experimental.pallas import tpu as pltpu


# ----------------------------- Pallas kernels -------------------------------

def _x4_fused_kernel(x4_ref, wc_ref, w1p_ref, cls_ref, m0_ref):
    """Single pass over x4 per batch:
       - GAP over HW + classifier (1x1 conv, no bias)  -> cls logits
       - folded 512 -> 1 channel projection (w1p)      -> m0 column
    """
    x = x4_ref[0]                                                     # (HW, C4) f32
    xm = jnp.mean(x, axis=0, keepdims=True)                           # (1, C4)
    cls_ref[0] = jnp.dot(xm, wc_ref[...], preferred_element_type=jnp.float32)   # (1, C1)
    m0_ref[0] = jnp.dot(x, w1p_ref[...], preferred_element_type=jnp.float32)    # (HW, 1)


def _attn_head_kernel(attn_ref, mr_ref, rct_ref, w2a_ref, bias_ref, out_ref):
    """One (batch, row-tile) step of attn_pred.

    attn_ref : (1, HEADS, TR, N) bf16   -- dominant HBM stream
    mr_ref   : (1, TR, W) f32           -- row-resized folded x4 map
    rct_ref  : (W, N) f32               -- column-resize operator (transposed)
    w2a_ref  : (HEADS,) f32 in SMEM     -- attn_proj weights for the attn half
    bias_ref : (1,) f32 in SMEM         -- folded bias (b1 @ w2b + b2)
    """
    heads = attn_ref.shape[1]

    # x4 branch: single small matmul per tile (column resize of mr).
    zx = jnp.dot(mr_ref[0], rct_ref[...], preferred_element_type=jnp.float32)   # (TR, N)

    # 8-head contraction on the VPU: bf16 loads, f32 accumulation, pairwise tree
    # (shorter dependent VALU chain than a serial s += chain).
    terms = [attn_ref[0, h].astype(jnp.float32) * w2a_ref[h] for h in range(heads)]
    while len(terms) > 1:
        nxt = [terms[i] + terms[i + 1] for i in range(0, len(terms) - 1, 2)]
        if len(terms) % 2:
            nxt.append(terms[-1])
        terms = nxt

    s = zx + terms[0] + bias_ref[0]
    out_ref[0] = jax.nn.sigmoid(s)


# ------------------------------- helpers ------------------------------------

def _interp_matrix(out_size, in_size):
    """Row-operator of a 1-D bilinear resize with align_corners=True.

    NOTE: every row sums to exactly 1; this is what makes folding the
    attn_proj1 bias through the resize valid.  Guarded by an assert below.
    """
    if in_size == 1:
        return np.ones((out_size, 1), np.float32)
    src = np.arange(out_size, dtype=np.float64) * (in_size - 1) / max(out_size - 1, 1)
    i0 = np.clip(np.floor(src).astype(np.int64), 0, in_size - 2)
    frac = src - i0
    R = np.zeros((out_size, in_size), np.float32)
    R[np.arange(out_size), i0] = (1.0 - frac).astype(np.float32)
    R[np.arange(out_size), i0 + 1] = frac.astype(np.float32)
    assert np.allclose(R.sum(axis=1), 1.0, atol=1e-6)   # bias-fold precondition
    return R


def _vmem_capacity_bytes():
    """Generation-aware VMEM size; conservative fallback = v7x (64 MiB)."""
    try:
        info = pltpu.get_tpu_info()
        return int(getattr(info, "vmem_capacity_bytes", 64 << 20))
    except Exception:
        return 64 << 20


def _pick_row_tile(N, heads, W, attn_bytes, vmem_bytes):
    """Largest legal row tile whose double-buffered working set fits ~half VMEM."""
    per_row = 2 * (heads * N * attn_bytes    # attn input block (double-buffered)
                   + W * 4                   # mr input block
                   + N * 4)                  # output block
    resident = 2 * W * N * 4                 # RcT (constant index_map)
    budget = max(int(vmem_bytes * 0.5) - resident, per_row * 8)
    max_rows = max(budget // per_row, 8)
    if N <= max_rows:
        return N                              # whole-N block: legal (equals full dim)
    if N % 8 != 0:
        return N
    candidates = [t for t in range(8, N + 1, 8) if N % t == 0]
    fitting = [t for t in candidates if t <= max_rows]
    return max(fitting) if fitting else min(candidates)


# ------------------------------- wrapper ------------------------------------

def wetr603_head(x4_nchw, attn_map, params, *, row_tile=None):
    """x4_nchw: (B, 512, H, W) f32; attn_map: (B, HEADS, N, N) f32, N == H*W."""
    B, C4, H, W = x4_nchw.shape
    _, HEADS, N, N2 = attn_map.shape
    assert N == N2 and N == H * W
    C1 = params["wc"].shape[1]

    vmem_bytes = _vmem_capacity_bytes()
    vmem_limit = min(int(vmem_bytes * 0.9), 128 << 20)

    attn_bf = attn_map.astype(jnp.bfloat16)            # halve the dominant HBM stream
    attn_bytes = attn_bf.dtype.itemsize

    if row_tile is None:
        row_tile = _pick_row_tile(N, HEADS, W, attn_bytes, vmem_bytes)
    assert N % row_tile == 0 and (row_tile % 8 == 0 or row_tile == N)
    R = N // row_tile

    # --- layout glue (pure layout, no heavy compute) ---
    x4_flat = jnp.transpose(x4_nchw, (0, 2, 3, 1)).reshape(B, H * W, C4)

    # --- fold the x4a half of attn_proj into attn_proj1 ---
    # cat order in the module: cat((attn, x4a), dim=1)
    w2 = params["w2"]
    w2a = w2[:HEADS]                                     # attention-head weights
    w2b = w2[HEADS:]                                     # x4a-channel weights
    w1p = (params["w1"] @ w2b).reshape(C4, 1)            # folded 512->1 weight
    bias = (params["b1"] @ w2b + params["b2"][0]).reshape(1)

    # separable bilinear resize operators (align_corners=True)
    Rr = jnp.asarray(_interp_matrix(N, H))               # (N, H)
    RcT = jnp.asarray(_interp_matrix(N, W)).T            # (W, N)

    # ---- kernel 1: single pass over x4 -> classifier logits + folded m0 ----
    cls_out, m0_col = pl.pallas_call(
        _x4_fused_kernel,
        out_shape=(jax.ShapeDtypeStruct((B, 1, C1), jnp.float32),
                   jax.ShapeDtypeStruct((B, H * W, 1), jnp.float32)),
        grid_spec=pltpu.PrefetchScalarGridSpec(
            num_scalar_prefetch=0,
            grid=(B,),
            in_specs=[
                pl.BlockSpec((1, H * W, C4), lambda b: (b, 0, 0)),
                pl.BlockSpec((C4, C1), lambda b: (0, 0)),
                pl.BlockSpec((C4, 1), lambda b: (0, 0)),
            ],
            out_specs=[
                pl.BlockSpec((1, 1, C1), lambda b: (b, 0, 0)),
                pl.BlockSpec((1, H * W, 1), lambda b: (b, 0, 0)),
            ],
        ),
        compiler_params=pltpu.CompilerParams(
            dimension_semantics=("parallel",),
            vmem_limit_bytes=vmem_limit),
    )(x4_flat, params["wc"], w1p)

    # tiny row-resize (B*N*W floats) done in plain XLA outside the kernels
    m0 = m0_col.reshape(B, H, W)
    mr_full = jnp.einsum("nh,bhw->bnw", Rr, m0)           # (B, N, W)

    # ---- kernel 2: HBM-bound attention head contraction + sigmoid ----
    attn_out = pl.pallas_call(
        _attn_head_kernel,
        out_shape=jax.ShapeDtypeStruct((B, N, N), jnp.float32),
        grid_spec=pltpu.PrefetchScalarGridSpec(
            num_scalar_prefetch=0,
            grid=(B, R),
            in_specs=[
                pl.BlockSpec((1, HEADS, row_tile, N), lambda b, r: (b, 0, r, 0)),
                pl.BlockSpec((1, row_tile, W), lambda b, r: (b, r, 0)),
                pl.BlockSpec((W, N), lambda b, r: (0, 0)),
                pl.BlockSpec(memory_space=pltpu.MemorySpace.SMEM),    # w2a
                pl.BlockSpec(memory_space=pltpu.MemorySpace.SMEM),    # folded bias
            ],
            out_specs=pl.BlockSpec((1, row_tile, N), lambda b, r: (b, r, 0)),
        ),
        compiler_params=pltpu.CompilerParams(
            dimension_semantics=("parallel", "parallel"),
            vmem_limit_bytes=vmem_limit),
    )(attn_bf, mr_full, RcT, w2a, bias)

    return cls_out.reshape(B, C1), attn_out


# ------------------------- pure-JAX reference --------------------------------
# Unfolded f32 math, mirroring the PyTorch module step by step.

def ref_forward(x4_nchw, attn_map, params):
    B, C4, H, W = x4_nchw.shape
    N = attn_map.shape[-1]
    # attn_proj1: 1x1 conv 512 -> 8 (+bias)
    y = (jnp.einsum("bchw,ck->bkhw", x4_nchw, params["w1"])
         + params["b1"][None, :, None, None])
    # bilinear resize (H, W) -> (N, N), align_corners=True
    Rr = jnp.asarray(_interp_matrix(N, H))
    Rc = jnp.asarray(_interp_matrix(N, W))
    z = jnp.einsum("ph,bkhw,qw->bkpq", Rr, y, Rc)
    # attn_proj on cat([attn, x4a]) 16 -> 1 (+bias), sigmoid, take channel 0
    cat = jnp.concatenate([attn_map, z], axis=1)
    s = jnp.einsum("bcpq,c->bpq", cat, params["w2"]) + params["b2"][0]
    attn_pred = jax.nn.sigmoid(s)
    # adaptive_avg_pool2d + classifier (no bias)
    cls = jnp.mean(x4_nchw, axis=(2, 3)) @ params["wc"]
    return cls, attn_pred


# ----------------------------------- main ------------------------------------

if __name__ == "__main__":
    B, H, W = 2, 8, 8
    C4 = 512                      # attn_proj1 / classifier in_channels (fixed by module)
    HEADS = 8                     # stage-4 attention heads
    NUM_CLASSES = 5
    C1 = NUM_CLASSES - 1
    N = H * W

    key = jax.random.PRNGKey(0)
    ks = jax.random.split(key, 7)

    # deterministic synthetic parameters (shapes from the module __init__)
    params = {
        # attn_proj1: Conv2d(512, 8, 1, bias=True)  -- stored as (C_in, C_out)
        "w1": jax.random.normal(ks[0], (C4, HEADS), jnp.float32) / np.sqrt(C4),
        "b1": jax.random.normal(ks[1], (HEADS,), jnp.float32) * 0.01,
        # attn_proj: Conv2d(16, 1, 1, bias=True)
        "w2": jax.random.normal(ks[2], (2 * HEADS,), jnp.float32) / np.sqrt(2 * HEADS),
        "b2": jax.random.normal(ks[3], (1,), jnp.float32) * 0.01,
        # classifier: Conv2d(512, num_classes-1, 1, bias=False)
        "wc": jax.random.normal(ks[4], (C4, C1), jnp.float32) / np.sqrt(C4),
    }

    # synthetic encoder outputs (stand-ins for mix_transformer results)
    x4 = jax.random.normal(ks[5], (B, C4, H, W), jnp.float32)             # NCHW
    attn_map = jax.nn.softmax(
        jax.random.normal(ks[6], (B, HEADS, N, N), jnp.float32), axis=-1)

    cls_x4, attn_pred = wetr603_head(x4, attn_map, params)
    cls_x4 = jax.block_until_ready(cls_x4)
    attn_pred = jax.block_until_ready(attn_pred)

    cls_ref, attn_pred_ref = ref_forward(x4, attn_map, params)
    assert cls_x4.shape == (B, C1)
    assert attn_pred.shape == (B, N, N)
    # cls path is f32 end-to-end -> tight tolerance.
    np.testing.assert_allclose(np.asarray(cls_x4), np.asarray(cls_ref),
                               rtol=1e-4, atol=1e-5)
    # attn path loads the attention stream in bf16 (f32 accumulation) ->
    # slightly relaxed tolerance vs the pure-f32 reference.
    np.testing.assert_allclose(np.asarray(attn_pred), np.asarray(attn_pred_ref),
                               rtol=1e-2, atol=5e-3)
    print("KERNEL_OK")
</pallas_src>

<mosaic_0001>
module attributes {stable_mosaic.version = 11 : i64} {
  func.func @_x4_fused_kernel(%arg0: i32, %arg1: memref<1x64x512xf32, #tpu.memory_space<vmem>>, %arg2: memref<512x4xf32, #tpu.memory_space<vmem>>, %arg3: memref<512x1xf32, #tpu.memory_space<vmem>>, %arg4: memref<1x1x4xf32, #tpu.memory_space<vmem>>, %arg5: memref<1x64x1xf32, #tpu.memory_space<vmem>>) attributes {dimension_semantics = [#tpu.dimension_semantics<parallel>], iteration_bounds = array<i64: 2>, scalar_prefetch = 0 : i64, scratch_operands = 0 : i64, tpu.core_type = #tpu.core_type<tc>, window_params = [{transform_indices = @transform_0, window_bounds = array<i64: 1, 64, 512>}, {pipeline_mode = #tpu.pipeline_mode<synchronous>, transform_indices = @transform_1, window_bounds = array<i64: 512, 4>}, {pipeline_mode = #tpu.pipeline_mode<synchronous>, transform_indices = @transform_2, window_bounds = array<i64: 512, 1>}, {transform_indices = @transform_3, window_bounds = array<i64: 1, 1, 4>}, {transform_indices = @transform_4, window_bounds = array<i64: 1, 64, 1>}]} {
    %c0 = arith.constant 0 : index
    %c0_0 = arith.constant 0 : index
    %c0_1 = arith.constant 0 : index
    %0 = vector.load %arg1[%c0, %c0_0, %c0_1] : memref<1x64x512xf32, #tpu.memory_space<vmem>>, vector<1x64x512xf32>
    %1 = vector.shape_cast %0 : vector<1x64x512xf32> to vector<64x512xf32>
    %cst = arith.constant dense<0.000000e+00> : vector<512xf32>
    %2 = vector.multi_reduction <add>, %1, %cst [0] : vector<64x512xf32> to vector<512xf32>
    %3 = vector.shape_cast %2 : vector<512xf32> to vector<1x512xf32>
    %cst_2 = arith.constant 6.400000e+01 : f32
    %4 = vector.broadcast %cst_2 : f32 to vector<1x512xf32>
    %5 = arith.divf %3, %4 : vector<1x512xf32>
    %c0_3 = arith.constant 0 : index
    %c0_4 = arith.constant 0 : index
    %6 = vector.load %arg2[%c0_3, %c0_4] : memref<512x4xf32, #tpu.memory_space<vmem>>, vector<512x4xf32>
    %cst_5 = arith.constant dense<0.000000e+00> : vector<1x4xf32>
    %7 = tpu.matmul %5, %6, %cst_5 {dimension_numbers = #tpu.dot_dimension_numbers<[1], [0], [0], [1], [0, 0, 1, 1], [], []>} : vector<1x512xf32>, vector<512x4xf32>, vector<1x4xf32> -> vector<1x4xf32>
    %c0_6 = arith.constant 0 : index
    %c0_7 = arith.constant 0 : index
    %c0_8 = arith.constant 0 : index
    %8 = vector.load %arg4[%c0_6, %c0_7, %c0_8] : memref<1x1x4xf32, #tpu.memory_space<vmem>>, vector<1x1x4xf32>
    %9 = vector.shape_cast %8 : vector<1x1x4xf32> to vector<1x4xf32>
    %10 = vector.shape_cast %7 : vector<1x4xf32> to vector<1x1x4xf32>
    tpu.vector_store %arg4[%c0_6, %c0_7, %c0_8], %10 {strides = array<i32>} : memref<1x1x4xf32, #tpu.memory_space<vmem>>, vector<1x1x4xf32>,
    %c0_9 = arith.constant 0 : index
    %c0_10 = arith.constant 0 : index
    %11 = vector.load %arg3[%c0_9, %c0_10] : memref<512x1xf32, #tpu.memory_space<vmem>>, vector<512x1xf32>
    %cst_11 = arith.constant dense<0.000000e+00> : vector<64x1xf32>
    %12 = tpu.matmul %1, %11, %cst_11 {dimension_numbers = #tpu.dot_dimension_numbers<[1], [0], [0], [1], [0, 0, 1, 1], [], []>} : vector<64x512xf32>, vector<512x1xf32>, vector<64x1xf32> -> vector<64x1xf32>
    %c0_12 = arith.constant 0 : index
    %c0_13 = arith.constant 0 : index
    %c0_14 = arith.constant 0 : index
    %13 = vector.load %arg5[%c0_12, %c0_13, %c0_14] : memref<1x64x1xf32, #tpu.memory_space<vmem>>, vector<1x64x1xf32>
    %14 = vector.shape_cast %13 : vector<1x64x1xf32> to vector<64x1xf32>
    %15 = vector.shape_cast %12 : vector<64x1xf32> to vector<1x64x1xf32>
    tpu.vector_store %arg5[%c0_12, %c0_13, %c0_14], %15 {strides = array<i32>} : memref<1x64x1xf32, #tpu.memory_space<vmem>>, vector<1x64x1xf32>,
    return
  }
  func.func @transform_0(%arg0: i32) -> (i32, i32, i32) {
    %c0_i32 = arith.constant 0 : i32
    %c0_i32_0 = arith.constant 0 : i32
    %c0_i32_1 = arith.constant 0 : i32
    return %arg0, %c0_i32, %c0_i32_0 : i32, i32, i32
  }
  func.func @transform_1(%arg0: i32) -> (i32, i32) {
    %c0_i32 = arith.constant 0 : i32
    %c0_i32_0 = arith.constant 0 : i32
    %c0_i32_1 = arith.constant 0 : i32
    return %c0_i32, %c0_i32_0 : i32, i32
  }
  func.func @transform_2(%arg0: i32) -> (i32, i32) {
    %c0_i32 = arith.constant 0 : i32
    %c0_i32_0 = arith.constant 0 : i32
    %c0_i32_1 = arith.constant 0 : i32
    return %c0_i32, %c0_i32_0 : i32, i32
  }
  func.func @transform_3(%arg0: i32) -> (i32, i32, i32) {
    %c0_i32 = arith.constant 0 : i32
    %c0_i32_0 = arith.constant 0 : i32
    %c0_i32_1 = arith.constant 0 : i32
    return %arg0, %c0_i32, %c0_i32_0 : i32, i32, i32
  }
  func.func @transform_4(%arg0: i32) -> (i32, i32, i32) {
    %c0_i32 = arith.constant 0 : i32
    %c0_i32_0 = arith.constant 0 : i32
    %c0_i32_1 = arith.constant 0 : i32
    return %arg0, %c0_i32, %c0_i32_0 : i32, i32, i32
  }
}

</mosaic_0001>

<bundles_post_ra>
// kernel: tpu_custom_call.1
= control target key start
LH: loop header
LB: loop body
LE: loop exit
PB: predicated region body
PF: predicated region fallthrough
CT: control target
= control target key end

     0   :  { %10 = vsyncpa [#allocation3], 0  ;;  %s1598_s0 = inlined_call_operand.vmem [shape: f32[2,64,512], index: 0, kind: input, shape index: {}]   ;;  %s1599_s1 = inlined_call_operand.vmem [shape: f32[512,4], index: 1, kind: input, shape index: {}]   ;;  %s1600_s2 = inlined_call_operand.vmem [shape: f32[512,1], index: 2, kind: input, shape index: {}]   ;;  %s1601_s3 = inlined_call_operand.hbm [shape: f32[2,1,4], index: 3, kind: output, shape index: {0}]   ;;  %s1602_s4 = inlined_call_operand.vmem [shape: f32[2,64,1], index: 4, kind: output, shape index: {1}]  }
   0x1   :  { %12 = vsyncpa [#allocation3 + $0x1], 0  ;;  %s931_s15 = smov 0   ;;  %s933_s16 = smov 0  }
   0x2   :  { %s935_s17 = smov 0   ;;  %s937_s18 = smov 0  }
   0x3 LB: > { %s952_s19 = sadd.s32 4294967295, %s903_s18   ;;  %s787_s20 = sadd.s32 4294967294, %s903_s18   ;;  %s903_s18 = sphi %s937_s18, %s1608_s18   ;;  %s899_s17 = sphi %s935_s17, %s1607_s17   ;;  %s895_s16 = sphi %s933_s16, %s1606_s16   ;;  %s891_s15 = sphi %s931_s15, %s1605_s15  }
   0x4   : > { %s956_s21 = sadd.s32 1, %s903_s18   ;;  %s93_s22 = sadd.s32 1, %s899_s17 }
   0x5   : > { %s90_s23 = ssub.s32 %s903_s18, %s956_s21  ;;  %p103_p0 = scmp.ne.s32.totalorder %s899_s17, %s895_s16 }
   0x6   : > { %p91_p1 = scmp.eq.s32.totalorder %s90_s23, 0  ;;  %p104_p2 = scmp.eq.s32.totalorder %s952_s19, 1 }
   0x7   : > { %p109_p3 = scmp.ne.s32.totalorder %s895_s16, %s891_s15  ;;  %p110_p4 = scmp.eq.s32.totalorder %s787_s20, 1 }
   0x8   : > { %s967_s24 = scalar_select %p91_p1, %s899_s17, %s93_s22  }
   0x9   : > { %p969_p5 = por %p104_p2, %p103_p0  ;;  %p973_p6 = por %p110_p4, %p109_p3 }
   0xa   : > { %p790_p7 = scmp.ge.s32.totalorder %s903_s18, 1  ;;  %p168_p8 = scmp.lt.s32.totalorder %s903_s18, 3 }
   0xc   : > { %p169_p9 = pnand %p790_p7, %p168_p8 }
   0xd   : > { %p198_p10 = scmp.lt.s32.totalorder (!%p169_p9), %s952_s19, 1  ;;  %s189_s5 = sand.u32 (!%p169_p9), 1, %s895_s16  }
   0xe   : > { %172 = sbr.rel (%p169_p9) target bundleno = 289 (0x121), region = 32  ;;  %s700_s8 = scalar_lea.hbm (!%p169_p9), %s1601_s3, %s952_s19 }
   0xf   : > { %s704_s10 = sshll.u32 (!%p169_p9), %s700_s8, 4  ;;  %s687_s13 = scalar_lea.sflag (!%p169_p9), [#allocation3], %s189_s5  ;;  %s705_s10 = int_to_ptr.hbm [resolvable:$true] %s704_s10 }
  0x10   : > { %s855_s20 = sshra.s32 (!%p169_p9), %s705_s10, 4  ;;  %s861_s27 = scalar_lea.hbm (!%p169_p9), %s1601_s3, 2  ;;  %s856_s20 = int_to_ptr.hbm [resolvable:$true] %s855_s20 }
  0x11   : > { %p862_p0 = scmp.lt.s32.totalorder (!%p169_p9), %s856_s20, %s1601_s3 }
  0x13   : > { %v350_v0 = vld [vmem:[%s1599_s1 + $0x178] sm:$0xff]  ;;  %v349_v1 = vld [vmem:[%s1599_s1 + $0x170] sm:$0xff]  ;;  %v348_v5 = vld [vmem:[%s1599_s1 + $0x168] sm:$0xff]  ;;  %s1151_s11 = scalar_select %p198_p10, %s952_s19, 1  ;;  %vm447_vm1 = vcmask 24576  }
  0x14   : > { %v366_v2 = vld [vmem:[%s1599_s1 + $0x1f8] sm:$0xff]  ;;  %407 = vmatpush.msra.mxu2 %v350_v0  ;;  %v365_v6 = vld [vmem:[%s1599_s1 + $0x1f0] sm:$0xff]  ;;  %v364_v9 = vld [vmem:[%s1599_s1 + $0x1e8] sm:$0xff]  ;;  %s857_s19 = scalar_lea.hbm %s856_s20, 1 }
  0x15   : > { %427 = vmatpush.msra.mxu3 %v366_v2  ;;  %v318_v3 = vld [vmem:[%s1599_s1 + $0x78] sm:$0xff]  ;;  %v317_v7 = vld [vmem:[%s1599_s1 + $0x70] sm:$0xff]  ;;  %v316_v10 = vld [vmem:[%s1599_s1 + $0x68] sm:$0xff]  ;;  %s797_s12 = sshll.u32 %s1151_s11, 8  ;;  %p858_p11 = scmp.ne.s32.totalorder %s856_s20, %s857_s19 }
  0x16   : > { %v334_v4 = vld [vmem:[%s1599_s1 + $0xf8] sm:$0xff]  ;;  %367 = vmatpush.msra.mxu0 %v318_v3  ;;  %v333_v8 = vld [vmem:[%s1599_s1 + $0xf0] sm:$0xff]  ;;  %408 = vmatpush.msra.mxu2 %v349_v1  ;;  %v347_v11 = vld [vmem:[%s1599_s1 + $0x160] sm:$0xff]  ;;  %s1202_s14 = scalar_lea.vmem %s1598_s0, %s797_s12  ;;  %p863_p1 = scmp.lt.s32.totalorder %s861_s27, %s857_s19 }
  0x17   : > { %387 = vmatpush.msra.mxu1 %v334_v4  ;;  %428 = vmatpush.msra.mxu3 %v365_v6  ;;  %v332_v12 = vld [vmem:[%s1599_s1 + $0xe8] sm:$0xff]  ;;  %v363_v13 = vld [vmem:[%s1599_s1 + $0x1e0] sm:$0xff]  ;;  %v346_v16 = vld [vmem:[%s1599_s1 + $0x158] sm:$0xff]  ;;  %p859_p12 = pnand %p858_p11, %p969_p5 }
  0x18   : > { %368 = vmatpush.msra.mxu0 %v317_v7  ;;  %409 = vmatpush.msra.mxu2 %v348_v5  ;;  %v315_v14 = vld [vmem:[%s1599_s1 + $0x60] sm:$0xff]  ;;  %v362_v17 = vld [vmem:[%s1599_s1 + $0x1d8] sm:$0xff]  ;;  %v345_v20 = vld [vmem:[%s1599_s1 + $0x150] sm:$0xff]  ;;  %p864_p2 = por %p863_p1, %p862_p0 }
  0x19   : > { %388 = vmatpush.msra.mxu1 %v333_v8  ;;  %429 = vmatpush.msra.mxu3 %v364_v9  ;;  %v331_v15 = vld [vmem:[%s1599_s1 + $0xe0] sm:$0xff]  ;;  %v314_v18 = vld [vmem:[%s1599_s1 + $0x58] sm:$0xff]  ;;  %v361_v21 = vld [vmem:[%s1599_s1 + $0x1d0] sm:$0xff]  ;;  %p860_p13 = pneg %p859_p12 }
  0x1a   : > { %369 = vmatpush.msra.mxu0 %v316_v10  ;;  %410 = vmatpush.msra.mxu2 %v347_v11  ;;  %v330_v19 = vld [vmem:[%s1599_s1 + $0xd8] sm:$0xff]  ;;  %v313_v22 = vld [vmem:[%s1599_s1 + $0x50] sm:$0xff]  ;;  %v344_v24 = vld [vmem:[%s1599_s1 + $0x148] sm:$0xff] }
  0x1b   : > { %389 = vmatpush.msra.mxu1 %v332_v12  ;;  %430 = vmatpush.msra.mxu3 %v363_v13  ;;  %v329_v23 = vld [vmem:[%s1599_s1 + $0xd0] sm:$0xff]  ;;  %v360_v25 = vld [vmem:[%s1599_s1 + $0x1c8] sm:$0xff]  ;;  %v343_v28 = vld [vmem:[%s1599_s1 + $0x140] sm:$0xff]  ;;  %p865_p3 = pnand %p864_p2, %p860_p13 }
  0x1c   : > { %370 = vmatpush.msra.mxu0 %v315_v14  ;;  %411 = vmatpush.msra.mxu2 %v346_v16  ;;  %v312_v26 = vld [vmem:[%s1599_s1 + $0x48] sm:$0xff]  ;;  %v359_v29 = vld [vmem:[%s1599_s1 + $0x1c0] sm:$0xff]  ;;  %v342_v32 = vld [vmem:[%s1599_s1 + $0x138] sm:$0xff]  ;;  %v905_v16 = vmov 64.0  }
  0x1d   : > { %390 = vmatpush.msra.mxu1 %v331_v15  ;;  %431 = vmatpush.msra.mxu3 %v362_v17  ;;  %v328_v27 = vld [vmem:[%s1599_s1 + $0xc8] sm:$0xff]  ;;  %v311_v30 = vld [vmem:[%s1599_s1 + $0x40] sm:$0xff]  ;;  %v358_v33 = vld [vmem:[%s1599_s1 + $0x1b8] sm:$0xff]  ;;  %839 = vrcp.f32 %v905_v16 }
  0x1e   : > { %371 = vmatpush.msra.mxu0 %v314_v18  ;;  %412 = vmatpush.msra.mxu2 %v345_v20  ;;  %v327_v31 = vld [vmem:[%s1599_s1 + $0xc0] sm:$0xff]  ;;  %v310_v34 = vld [vmem:[%s1599_s1 + $0x38] sm:$0xff]  ;;  %v341_v36 = vld [vmem:[%s1599_s1 + $0x130] sm:$0xff] }
  0x1f   : > { %391 = vmatpush.msra.mxu1 %v330_v19  ;;  %432 = vmatpush.msra.mxu3 %v361_v21  ;;  %v326_v35 = vld [vmem:[%s1599_s1 + $0xb8] sm:$0xff]  ;;  %v357_v37 = vld [vmem:[%s1599_s1 + $0x1b0] sm:$0xff]  ;;  %v340_v40 = vld [vmem:[%s1599_s1 + $0x128] sm:$0xff] }
  0x20   : > { %372 = vmatpush.msra.mxu0 %v313_v22  ;;  %413 = vmatpush.msra.mxu2 %v344_v24  ;;  %v309_v38 = vld [vmem:[%s1599_s1 + $0x30] sm:$0xff]  ;;  %v356_v41 = vld [vmem:[%s1599_s1 + $0x1a8] sm:$0xff]  ;;  %v339_v44 = vld [vmem:[%s1599_s1 + $0x120] sm:$0xff] }
  0x21   : > { %392 = vmatpush.msra.mxu1 %v329_v23  ;;  %433 = vmatpush.msra.mxu3 %v360_v25  ;;  %v325_v39 = vld [vmem:[%s1599_s1 + $0xb0] sm:$0xff]  ;;  %v308_v42 = vld [vmem:[%s1599_s1 + $0x28] sm:$0xff]  ;;  %v355_v45 = vld [vmem:[%s1599_s1 + $0x1a0] sm:$0xff] }
  0x22   : > { %373 = vmatpush.msra.mxu0 %v312_v26  ;;  %414 = vmatpush.msra.mxu2 %v343_v28  ;;  %v324_v43 = vld [vmem:[%s1599_s1 + $0xa8] sm:$0xff]  ;;  %v307_v46 = vld [vmem:[%s1599_s1 + $0x20] sm:$0xff]  ;;  %v338_v48 = vld [vmem:[%s1599_s1 + $0x118] sm:$0xff] }
  0x23   : > { %393 = vmatpush.msra.mxu1 %v328_v27  ;;  %434 = vmatpush.msra.mxu3 %v359_v29  ;;  %v323_v47 = vld [vmem:[%s1599_s1 + $0xa0] sm:$0xff]  ;;  %v354_v49 = vld [vmem:[%s1599_s1 + $0x198] sm:$0xff]  ;;  %v337_v52 = vld [vmem:[%s1599_s1 + $0x110] sm:$0xff] }
  0x24   : > { %374 = vmatpush.msra.mxu0 %v311_v30  ;;  %415 = vmatpush.msra.mxu2 %v342_v32  ;;  %v306_v50 = vld [vmem:[%s1599_s1 + $0x18] sm:$0xff]  ;;  %v353_v53 = vld [vmem:[%s1599_s1 + $0x190] sm:$0xff]  ;;  %v336_v56 = vld [vmem:[%s1599_s1 + $0x108] sm:$0xff] }
  0x25   : > { %394 = vmatpush.msra.mxu1 %v327_v31  ;;  %435 = vmatpush.msra.mxu3 %v358_v33  ;;  %v322_v51 = vld [vmem:[%s1599_s1 + $0x98] sm:$0xff]  ;;  %v305_v54 = vld [vmem:[%s1599_s1 + $0x10] sm:$0xff]  ;;  %v352_v57 = vld [vmem:[%s1599_s1 + $0x188] sm:$0xff] }
  0x26   : > { %375 = vmatpush.msra.mxu0 %v310_v34  ;;  %416 = vmatpush.msra.mxu2 %v341_v36  ;;  %v321_v55 = vld [vmem:[%s1599_s1 + $0x90] sm:$0xff]  ;;  %v304_v58 = vld [vmem:[%s1599_s1 + $0x8] sm:$0xff]  ;;  %v335_v60 = vld [vmem:[%s1599_s1 + $0x100] sm:$0xff]  ;;  %v1285_v36 = vpop.eup %839 }
  0x27   : > { %395 = vmatpush.msra.mxu1 %v326_v35  ;;  %436 = vmatpush.msra.mxu3 %v357_v37  ;;  %v320_v59 = vld [vmem:[%s1599_s1 + $0x88] sm:$0xff]  ;;  %v351_v61 = vld [vmem:[%s1599_s1 + $0x180] sm:$0xff]  ;;  %v496_v62 = vld [vmem:[%s1600_s2 + $0x178] sm:$0xff]  ;;  %vm297_vm0 = vweird.f32 %v1285_v36 }
  0x28   : > { %376 = vmatpush.msra.mxu0 %v309_v38  ;;  %417 = vmatpush.msra.mxu2 %v340_v40  ;;  %v512_v63 = vld [vmem:[%s1600_s2 + $0x1f8] sm:$0xff]  ;;  %v303_v0 = vld [vmem:[%s1599_s1] sm:$0xff]  ;;  %v495_v2 = vld [vmem:[%s1600_s2 + $0x170] sm:$0xff] }
  0x29   : > { %396 = vmatpush.msra.mxu1 %v325_v39  ;;  %437 = vmatpush.msra.mxu3 %v356_v41  ;;  %v319_v1 = vld [vmem:[%s1599_s1 + $0x80] sm:$0xff]  ;;  %v464_v3 = vld [vmem:[%s1600_s2 + $0x78] sm:$0xff]  ;;  %v494_v5 = vld [vmem:[%s1600_s2 + $0x168] sm:$0xff] }
  0x2a   : > { %377 = vmatpush.msra.mxu0 %v308_v42  ;;  %418 = vmatpush.msra.mxu2 %v339_v44  ;;  %v480_v4 = vld [vmem:[%s1600_s2 + $0xf8] sm:$0xff]  ;;  %v511_v6 = vld [vmem:[%s1600_s2 + $0x1f0] sm:$0xff]  ;;  %v493_v9 = vld [vmem:[%s1600_s2 + $0x160] sm:$0xff] }
  0x2b   : > { %397 = vmatpush.msra.mxu1 %v324_v43  ;;  %438 = vmatpush.msra.mxu3 %v355_v45  ;;  %v463_v7 = vld [vmem:[%s1600_s2 + $0x70] sm:$0xff]  ;;  %v510_v10 = vld [vmem:[%s1600_s2 + $0x1e8] sm:$0xff]  ;;  %v492_v13 = vld [vmem:[%s1600_s2 + $0x158] sm:$0xff] }
  0x2c   : > { %378 = vmatpush.msra.mxu0 %v307_v46  ;;  %419 = vmatpush.msra.mxu2 %v338_v48  ;;  %v479_v8 = vld [vmem:[%s1600_s2 + $0xf0] sm:$0xff]  ;;  %v462_v11 = vld [vmem:[%s1600_s2 + $0x68] sm:$0xff]  ;;  %v509_v14 = vld [vmem:[%s1600_s2 + $0x1e0] sm:$0xff] }
  0x2d   : > { %398 = vmatpush.msra.mxu1 %v323_v47  ;;  %439 = vmatpush.msra.mxu3 %v354_v49  ;;  %v478_v12 = vld [vmem:[%s1600_s2 + $0xe8] sm:$0xff]  ;;  %v1229_v15 = vld [vmem:[%s1202_s14 + $0x10] sm:$0xff]  ;;  %v461_v17 = vld [vmem:[%s1600_s2 + $0x60] sm:$0xff] }
  0x2e   : > { %379 = vmatpush.msra.mxu0 %v306_v50  ;;  %420 = vmatpush.msra.mxu2 %v337_v52  ;;  %v1235_v18 = vld [vmem:[%s1202_s14 + $0x30] sm:$0xff]  ;;  %v477_v20 = vld [vmem:[%s1600_s2 + $0xe0] sm:$0xff]  ;;  %v508_v22 = vld [vmem:[%s1600_s2 + $0x1d8] sm:$0xff] }
  0x2f   : > { %399 = vmatpush.msra.mxu1 %v322_v51  ;;  %440 = vmatpush.msra.mxu3 %v353_v53  ;;  %v1238_v19 = vld [vmem:[%s1202_s14 + $0x50] sm:$0xff]  ;;  %v266_v23 = vadd.f32 %v1235_v18, %v1229_v15  ;;  %v460_v24 = vld [vmem:[%s1600_s2 + $0x58] sm:$0xff]  ;;  %v490_v27 = vld [vmem:[%s1600_s2 + $0x148] sm:$0xff] }
  0x30   : > { %380 = vmatpush.msra.mxu0 %v305_v54  ;;  %421 = vmatpush.msra.mxu2 %v336_v56  ;;  %v491_v21 = vld [vmem:[%s1600_s2 + $0x150] sm:$0xff]  ;;  %v476_v25 = vld [vmem:[%s1600_s2 + $0xd8] sm:$0xff]  ;;  %v489_v37 = vld [vmem:[%s1600_s2 + $0x140] sm:$0xff]  ;;  %v293_v54 = vmul.f32 64.0, %v1285_v36 }
  0x31   : > { %400 = vmatpush.msra.mxu1 %v321_v55  ;;  %441 = vmatpush.msra.mxu3 %v352_v57  ;;  %v1258_v26 = vld [vmem:[%s1202_s14 + $0x70] sm:$0xff]  ;;  %v267_v30 = vadd.f32 %v266_v23, %v1238_v19  ;;  %v1271_v31 = vld [vmem:[%s1202_s14 + $0x18] sm:$0xff]  ;;  %v506_v38 = vld [vmem:[%s1600_s2 + $0x1c8] sm:$0xff] }
  0x32   : > { %381 = vmatpush.msra.mxu0 %v304_v58  ;;  %422 = vmatpush.msra.mxu2 %v335_v60  ;;  %v507_v28 = vld [vmem:[%s1600_s2 + $0x1d0] sm:$0xff]  ;;  %v1280_v34 = vld [vmem:[%s1202_s14 + $0x38] sm:$0xff]  ;;  %v458_v39 = vld [vmem:[%s1600_s2 + $0x48] sm:$0xff] }
  0x33   : > { %401 = vmatpush.msra.mxu1 %v320_v59  ;;  %442 = vmatpush.msra.mxu3 %v351_v61  ;;  %v459_v29 = vld [vmem:[%s1600_s2 + $0x50] sm:$0xff]  ;;  %v1283_v35 = vld [vmem:[%s1202_s14 + $0x58] sm:$0xff]  ;;  %v268_v40 = vadd.f32 %v267_v30, %v1258_v26  ;;  %v279_v41 = vadd.f32 %v1280_v34, %v1271_v31  ;;  %v474_v42 = vld [vmem:[%s1600_s2 + $0xc8] sm:$0xff] }
  0x34   : > { %595 = vmatpush.msrb.mxu2 %v496_v62  ;;  %382 = vmatpush.msra.mxu0 %v303_v0  ;;  %v475_v32 = vld [vmem:[%s1600_s2 + $0xd0] sm:$0xff]  ;;  %v505_v43 = vld [vmem:[%s1600_s2 + $0x1c0] sm:$0xff]  ;;  %v1309_v45 = vld [vmem:[%s1202_s14 + $0x78] sm:$0xff] }
  0x35   : > { %636 = vmatpush.msrb.mxu3 %v512_v63  ;;  %402 = vmatpush.msra.mxu1 %v319_v1  ;;  %v1277_v33 = vld [vmem:[%s1202_s14 + $0x90] sm:$0xff]  ;;  %v488_v46 = vld [vmem:[%s1600_s2 + $0x138] sm:$0xff]  ;;  %v457_v47 = vld [vmem:[%s1600_s2 + $0x40] sm:$0xff]  ;;  %v280_v50 = vadd.f32 %v279_v41, %v1283_v35 }
  0x36   : > { %596 = vmatpush.msrb.mxu2 %v495_v2  ;;  %513 = vmatpush.msrb.mxu0 %v464_v3  ;;  %v1306_v44 = vld [vmem:[%s1202_s14 + $0xb0] sm:$0xff]  ;;  %v269_v49 = vadd.f32 %v268_v40, %v1277_v33  ;;  %v1323_v51 = vld [vmem:[%s1202_s14] sm:$0xff]  ;;  %v504_v53 = vld [vmem:[%s1600_s2 + $0x1b8] sm:$0xff] }
  0x37   : > { %554 = vmatpush.msrb.mxu1 %v480_v4  ;;  %637 = vmatpush.msrb.mxu3 %v511_v6  ;;  %v1318_v48 = vld [vmem:[%s1202_s14 + $0xd0] sm:$0xff]  ;;  %v473_v52 = vld [vmem:[%s1600_s2 + $0xc0] sm:$0xff]  ;;  %v1333_v55 = vld [vmem:[%s1202_s14 + $0x98] sm:$0xff]  ;;  %v281_v63 = vadd.f32 %v280_v50, %v1309_v45 }
  0x38   : > { %597 = vmatpush.msrb.mxu2 %v494_v5  ;;  %514 = vmatpush.msrb.mxu0 %v463_v7  ;;  %v1336_v56 = vld [vmem:[%s1202_s14 + $0x20] sm:$0xff]  ;;  %v487_v58 = vld [vmem:[%s1600_s2 + $0x130] sm:$0xff]  ;;  %v456_v59 = vld [vmem:[%s1600_s2 + $0x38] sm:$0xff]  ;;  %v270_v61 = vadd.f32 %v269_v49, %v1306_v44 }
  0x39   : > { %555 = vmatpush.msrb.mxu1 %v479_v8  ;;  %638 = vmatpush.msrb.mxu3 %v510_v10  ;;  %v1339_v57 = vld [vmem:[%s1202_s14 + $0x40] sm:$0xff]  ;;  %v1348_v60 = vld [vmem:[%s1202_s14 + $0xf0] sm:$0xff]  ;;  %v1352_v62 = vld [vmem:[%s1202_s14 + $0xb8] sm:$0xff]  ;;  %v240_v0 = vadd.f32 %v1336_v56, %v1323_v51  ;;  %v282_v7 = vadd.f32 %v281_v63, %v1333_v55 }
  0x3a   : > { %598 = vmatpush.msrb.mxu2 %v493_v9  ;;  %515 = vmatpush.msrb.mxu0 %v462_v11  ;;  %v1358_v1 = vld [vmem:[%s1202_s14 + $0x60] sm:$0xff]  ;;  %v1361_v2 = vld [vmem:[%s1202_s14 + $0x8] sm:$0xff]  ;;  %v472_v4 = vld [vmem:[%s1600_s2 + $0xb8] sm:$0xff]  ;;  %v271_v6 = vadd.f32 %v270_v61, %v1318_v48  ;;  %v294_v11 = vsub.f32 1.0, %v293_v54 }
  0x3b   : > { %556 = vmatpush.msrb.mxu1 %v478_v12  ;;  %639 = vmatpush.msrb.mxu3 %v509_v14  ;;  %v1364_v3 = vld [vmem:[%s1202_s14 + $0x28] sm:$0xff]  ;;  %v241_v8 = vadd.f32 %v240_v0, %v1339_v57  ;;  %v503_v10 = vld [vmem:[%s1600_s2 + $0x1b0] sm:$0xff]  ;;  %v1382_v12 = vld [vmem:[%s1202_s14 + $0xd8] sm:$0xff] }
  0x3c   : > { %599 = vmatpush.msrb.mxu2 %v492_v13  ;;  %516 = vmatpush.msrb.mxu0 %v461_v17  ;;  %v486_v5 = vld [vmem:[%s1600_s2 + $0x128] sm:$0xff]  ;;  %v1385_v13 = vld [vmem:[%s1202_s14 + $0x80] sm:$0xff]  ;;  %v253_v14 = vadd.f32 %v1364_v3, %v1361_v2  ;;  %v455_v16 = vld [vmem:[%s1600_s2 + $0x30] sm:$0xff]  ;;  %v295_v40 = vmul.f32 %v1285_v36, %v294_v11 }
  0x3d   : > { %557 = vmatpush.msrb.mxu1 %v477_v20  ;;  %640 = vmatpush.msrb.mxu3 %v508_v22  ;;  %v1376_v9 = vld [vmem:[%s1202_s14 + $0x48] sm:$0xff]  ;;  %v471_v17 = vld [vmem:[%s1600_s2 + $0xb0] sm:$0xff]  ;;  %v272_v20 = vadd.f32 %v271_v6, %v1348_v60  ;;  %v242_v22 = vadd.f32 %v241_v8, %v1358_v1  ;;  %v484_v49 = vld [vmem:[%s1600_s2 + $0x118] sm:$0xff] }
  0x3e   : > { %600 = vmatpush.msrb.mxu2 %v491_v21  ;;  %517 = vmatpush.msrb.mxu0 %v460_v24  ;;  %v283_v21 = vadd.f32 %v282_v7, %v1352_v62  ;;  %v1399_v23 = vld [vmem:[%s1202_s14 + $0x68] sm:$0xff]  ;;  %v1451_v61 = vld [vmem:[%s1202_s14 + $0xe0] sm:$0xff]  ;;  %v452_v8 = vld [vmem:[%s1600_s2 + $0x18] sm:$0xff] }
  0x3f   : > { %558 = vmatpush.msrb.mxu1 %v476_v25  ;;  %641 = vmatpush.msrb.mxu3 %v507_v28  ;;  %v502_v24 = vld [vmem:[%s1600_s2 + $0x1a8] sm:$0xff]  ;;  %v1405_v25 = vld [vmem:[%s1202_s14 + $0xf8] sm:$0xff]  ;;  %v254_v28 = vadd.f32 %v253_v14, %v1376_v9  ;;  %v273_v30 = vrot.slane %v272_v20, 4 }
  0x40   : > { %601 = vmatpush.msrb.mxu2 %v490_v27  ;;  %518 = vmatpush.msrb.mxu0 %v459_v29  ;;  %v1408_v27 = vld [vmem:[%s1202_s14 + $0xa0] sm:$0xff]  ;;  %v470_v41 = vld [vmem:[%s1600_s2 + $0xa8] sm:$0xff]  ;;  %v468_v14 = vld [vmem:[%s1600_s2 + $0x98] sm:$0xff] }
  0x41   : > { %559 = vmatpush.msrb.mxu1 %v475_v32  ;;  %642 = vmatpush.msrb.mxu3 %v506_v38  ;;  %v485_v29 = vld [vmem:[%s1600_s2 + $0x120] sm:$0xff]  ;;  %v454_v32 = vld [vmem:[%s1600_s2 + $0x28] sm:$0xff]  ;;  %v243_v38 = vadd.f32 %v242_v22, %v1385_v13 }
  0x42   : > { %602 = vmatpush.msrb.mxu2 %v489_v37  ;;  %519 = vmatpush.msrb.mxu0 %v458_v39  ;;  %v284_v37 = vadd.f32 %v283_v21, %v1382_v12  ;;  %v1420_v39 = vld [vmem:[%s1202_s14 + $0x88] sm:$0xff] }
  0x43   : > { %560 = vmatpush.msrb.mxu1 %v474_v42  ;;  %643 = vmatpush.msrb.mxu3 %v505_v43  ;;  %v501_v42 = vld [vmem:[%s1600_s2 + $0x1a0] sm:$0xff]  ;;  %v1442_v54 = vld [vmem:[%s1202_s14 + $0xa8] sm:$0xff] }
  0x44   : > { %603 = vmatpush.msrb.mxu2 %v488_v46  ;;  %520 = vmatpush.msrb.mxu0 %v457_v47  ;;  %v1430_v43 = vld [vmem:[%s1202_s14 + $0xc0] sm:$0xff]  ;;  %v255_v46 = vadd.f32 %v254_v28, %v1399_v23  ;;  %v274_v47 = vadd.f32 %v273_v30, %v272_v20  ;;  %v285_v50 = vadd.f32 %v284_v37, %v1405_v25  ;;  %v1459_v7 = vld [vmem:[%s1202_s14 + $0xc8] sm:$0xff]  ;;  %v451_v28 = vld [vmem:[%s1600_s2 + $0x10] sm:$0xff] }
  0x45   : > { %561 = vmatpush.msrb.mxu1 %v473_v52  ;;  %644 = vmatpush.msrb.mxu3 %v504_v53  ;;  %v453_v52 = vld [vmem:[%s1600_s2 + $0x20] sm:$0xff]  ;;  %v244_v53 = vadd.f32 %v243_v38, %v1408_v27  ;;  %v1475_v22 = vld [vmem:[%s1202_s14 + $0xe8] sm:$0xff]  ;;  %v467_v30 = vld [vmem:[%s1600_s2 + $0x90] sm:$0xff]  ;;  %s190_s14 = scalar_lea.vmem [#allocation2], %s189_s5 }
  0x46   : > { %604 = vmatpush.msrb.mxu2 %v487_v58  ;;  %521 = vmatpush.msrb.mxu0 %v456_v59  ;;  %v469_v58 = vld [vmem:[%s1600_s2 + $0xa0] sm:$0xff]  ;;  %v500_v59 = vld [vmem:[%s1600_s2 + $0x198] sm:$0xff]  ;;  %v256_v63 = vadd.f32 %v255_v46, %v1420_v39  ;;  %v275_v0 = vrot.slane %v274_v47, 2  ;;  %s702_s9 = sshll.u32 %s190_s14, 4  ;;  %s703_s9 = int_to_ptr.vmem [resolvable:$true] %s702_s9 }
  0x47   : > { %562 = vmatpush.msrb.mxu1 %v472_v4  ;;  %645 = vmatpush.msrb.mxu3 %v503_v10  ;;  %v286_v4 = vrot.slane %v285_v50, 4  ;;  %v245_v6 = vadd.f32 %v244_v53, %v1430_v43  ;;  %v296_v10 = vadd.f32 %v1285_v36, %v295_v40 }
  0x48   : > { %605 = vmatpush.msrb.mxu2 %v486_v5  ;;  %522 = vmatpush.msrb.mxu0 %v455_v16  ;;  %v483_v5 = vld [vmem:[%s1600_s2 + $0x110] sm:$0xff]  ;;  %v257_v11 = vadd.f32 %v256_v63, %v1442_v54  ;;  %v465_v63 = vld [vmem:[%s1600_s2 + $0x80] sm:$0xff] }
  0x49   : > { %563 = vmatpush.msrb.mxu1 %v471_v17  ;;  %646 = vmatpush.msrb.mxu3 %v502_v24  ;;  %v499_v16 = vld [vmem:[%s1600_s2 + $0x190] sm:$0xff]  ;;  %v276_v17 = vadd.f32 %v275_v0, %v274_v47  ;;  %v287_v20 = vadd.f32 %v286_v4, %v285_v50  ;;  %v246_v21 = vadd.f32 %v245_v6, %v1451_v61  ;;  %v482_v24 = vld [vmem:[%s1600_s2 + $0x108] sm:$0xff]  ;;  %v497_v50 = vld [vmem:[%s1600_s2 + $0x180] sm:$0xff] }
  0x4a   : > { %606 = vmatpush.msrb.mxu2 %v485_v29  ;;  %523 = vmatpush.msrb.mxu0 %v454_v32  ;;  %v258_v29 = vadd.f32 %v257_v11, %v1459_v7  ;;  %v498_v32 = vld [vmem:[%s1600_s2 + $0x188] sm:$0xff]  ;;  %v298_v46 = vsel %vm297_vm0, %v1285_v36, %v296_v10  ;;  %v449_v36 = vld [vmem:[%s1600_s2] sm:$0xff] }
  0x4b   : > { %564 = vmatpush.msrb.mxu1 %v470_v41  ;;  %647 = vmatpush.msrb.mxu3 %v501_v42  ;;  %v277_v37 = vrot.slane %v276_v17, 1  ;;  %v288_v38 = vrot.slane %v287_v20, 2  ;;  %v247_v40 = vrot.slane %v246_v21, 4  ;;  %v481_v41 = vld [vmem:[%s1600_s2 + $0x100] sm:$0xff]  ;;  %v450_v42 = vld [vmem:[%s1600_s2 + $0x8] sm:$0xff] }
  0x4c   : > { %607 = vmatpush.msrb.mxu2 %v484_v49  ;;  %524 = vmatpush.msrb.mxu0 %v453_v52  ;;  %v259_v47 = vadd.f32 %v258_v29, %v1475_v22  ;;  %v466_v49 = vld [vmem:[%s1600_s2 + $0x88] sm:$0xff] }
  0x4d   : > { %565 = vmatpush.msrb.mxu1 %v469_v58  ;;  %648 = vmatpush.msrb.mxu3 %v500_v59  ;;  %v278_v52 = vadd.f32 %v277_v37, %v276_v17  ;;  %v289_v53 = vadd.f32 %v288_v38, %v287_v20  ;;  %v248_v58 = vadd.f32 %v247_v40, %v246_v21 }
  0x4e   : > { %608 = vmatpush.msrb.mxu2 %v483_v5  ;;  %525 = vmatpush.msrb.mxu0 %v452_v8  ;;  %v260_v59 = vrot.slane %v259_v47, 4 }
  0x4f   : > { %566 = vmatpush.msrb.mxu1 %v468_v14  ;;  %649 = vmatpush.msrb.mxu3 %v499_v16  ;;  %v301_v0 = vmul.f32 %v298_v46, %v278_v52  ;;  %v290_v4 = vrot.slane %v289_v53, 1  ;;  %v249_v5 = vrot.slane %v248_v58, 2 }
  0x50   : > { %609 = vmatpush.msrb.mxu2 %v482_v24  ;;  %526 = vmatpush.msrb.mxu0 %v451_v28  ;;  %v261_v6 = vadd.f32 %v260_v59, %v259_v47 }
  0x51   : > { %567 = vmatpush.msrb.mxu1 %v467_v30  ;;  %650 = vmatpush.msrb.mxu3 %v498_v32  ;;  %v291_v8 = vadd.f32 %v290_v4, %v289_v53  ;;  %v250_v10 = vadd.f32 %v249_v5, %v248_v58 }
  0x52   : > { %610 = vmatpush.msrb.mxu2 %v481_v41  ;;  %527 = vmatpush.msrb.mxu0 %v450_v42  ;;  %v262_v11 = vrot.slane %v261_v6, 2 }
  0x53   : > { %568 = vmatpush.msrb.mxu1 %v466_v49  ;;  %651 = vmatpush.msrb.mxu3 %v497_v50  ;;  %v302_v14 = vmul.f32 %v298_v46, %v291_v8  ;;  %v251_v16 = vrot.slane %v250_v10, 1 }
  0x54   : > { %528 = vmatpush.msrb.mxu0 %v449_v36  ;;  %423 = vmatmul.f32.vlgmr.msra.gmra.mxu2 %v301_v0  ;;  %v263_v17 = vadd.f32 %v262_v11, %v261_v6 }
  0x55   : > { %569 = vmatpush.msrb.mxu1 %v465_v63  ;;  %443 = vmatmul.f32.vlgmr.msra.gmra.mxu3 %v302_v14  ;;  %v252_v20 = vadd.f32 %v251_v16, %v250_v10 }
  0x56   : > { %v264_v21 = vrot.slane %v263_v17, 1 }
  0x57   : > { %v299_v24 = vmul.f32 %v298_v46, %v252_v20 }
  0x58   : > { %v265_v28 = vadd.f32 %v264_v21, %v263_v17 }
  0x59   : > { %383 = vmatmul.f32.vlgmr.msra.gmra.mxu0 %v299_v24 }
  0x5a   : > { %v300_v29 = vmul.f32 %v298_v46, %v265_v28 }
  0x5c   : > { %611 = vmatmul.f32.vlgmr.msrb.gmra.mxu2 %v1229_v15  ;;  %403 = vmatmul.f32.vlgmr.msra.gmra.mxu1 %v300_v29 }
  0x5d   : > { %652 = vmatmul.f32.vlgmr.msrb.gmra.mxu3 %v1271_v31 }
  0x61   : > { %529 = vmatmul.f32.vlgmr.msrb.gmra.mxu0 %v1323_v51 }
  0x64   : > { %614 = vmatmul.f32.gmra.mxu2 %v1235_v18  ;;  %570 = vmatmul.f32.vlgmr.msrb.gmra.mxu1 %v1361_v2 }
  0x65   : > { %655 = vmatmul.f32.gmra.mxu3 %v1280_v34 }
  0x69   : > { %532 = vmatmul.f32.gmra.mxu0 %v1336_v56 }
  0x6c   : > { %617 = vmatmul.f32.gmra.mxu2 %v1238_v19  ;;  %573 = vmatmul.f32.gmra.mxu1 %v1364_v3 }
  0x6d   : > { %658 = vmatmul.f32.gmra.mxu3 %v1283_v35 }
  0x71   : > { %535 = vmatmul.f32.gmra.mxu0 %v1339_v57 }
  0x74   : > { %620 = vmatmul.f32.gmra.mxu2 %v1258_v26  ;;  %576 = vmatmul.f32.gmra.mxu1 %v1376_v9 }
  0x75   : > { %661 = vmatmul.f32.gmra.mxu3 %v1309_v45 }
  0x79   : > { %538 = vmatmul.f32.gmra.mxu0 %v1358_v1 }
  0x7c   : > { %623 = vmatmul.f32.gmra.mxu2 %v1277_v33  ;;  %579 = vmatmul.f32.gmra.mxu1 %v1399_v23 }
  0x7d   : > { %664 = vmatmul.f32.gmra.mxu3 %v1333_v55 }
  0x81   : > { %541 = vmatmul.f32.gmra.mxu0 %v1385_v13 }
  0x84   : > { %626 = vmatmul.f32.gmra.mxu2 %v1306_v44  ;;  %582 = vmatmul.f32.gmra.mxu1 %v1420_v39 }
  0x85   : > { %667 = vmatmul.f32.gmra.mxu3 %v1352_v62 }
  0x89   : > { %544 = vmatmul.f32.gmra.mxu0 %v1408_v27 }
  0x8c   : > { %629 = vmatmul.f32.gmra.mxu2 %v1318_v48  ;;  %585 = vmatmul.f32.gmra.mxu1 %v1442_v54 }
  0x8d   : > { %670 = vmatmul.f32.gmra.mxu3 %v1382_v12 }
  0x91   : > { %547 = vmatmul.f32.gmra.mxu0 %v1430_v43 }
  0x94   : > { %632 = vmatmul.f32.gmra.mxu2 %v1348_v60  ;;  %588 = vmatmul.f32.gmra.mxu1 %v1459_v7 }
  0x95   : > { %673 = vmatmul.f32.gmra.mxu3 %v1405_v25 }
  0x99   : > { %550 = vmatmul.f32.gmra.mxu0 %v1451_v61 }
  0x9c   : > { %591 = vmatmul.f32.gmra.mxu1 %v1475_v22 }
  0xd6   : > { %v384_v18 = vpop.f32.mrf.mxu0 }
  0xd7   : > { %v424_v15 = vpop.f32.mrf.mxu2 }
  0xd8   : > { %v444_v19 = vpop.f32.mrf.mxu3 }
  0xd9   : > { %v404_v26 = vpop.f32.mrf.mxu1 }
  0xda   : > { %v405_v31 = vadd.f32 %v404_v26, %v384_v18 }
  0xdc   : > { %v425_v33 = vadd.f32 %v424_v15, %v405_v31 }
  0xde   : > { %v445_v35 = vadd.f32 %v444_v19, %v425_v33  ;;  %v530_v44 = vpop.f32.mrf.mxu0 }
  0xdf   : > { %v612_v34 = vpop.f32.mrf.mxu2 }
  0xe0   : > { %v653_v45 = vpop.f32.mrf.mxu3  ;;  %448 = vst.msk [vmem:[%s190_s14] sm:$0x1] %vm447_vm1, %v445_v35 }
  0xe1   : > { %v571_v48 = vpop.f32.mrf.mxu1 }
  0xe2   : > { %868 = shalt.err (!%p865_p3)
}
  0xe3   : > { %799 = dma.vmem_to_hbm [thread:$0]  (%p969_p5), %s703_s9, 16, %s705_s10, %s687_s13   ;;  %v572_v51 = vadd.f32 %v571_v48, %v530_v44  ;;  %vm677_vm2 = vcmask 7168  }
  0xe4   : > { %s798_s12 = sshll.u32 %s1151_s11, 6 }
  0xe5   : > { %v613_v55 = vadd.f32 %v612_v34, %v572_v51  ;;  %s1563_s6 = scalar_lea.vmem %s1602_s4, %s798_s12 }
  0xe6   : > { %v533_v60 = vpop.f32.mrf.mxu0 }
  0xe7   : > { %v615_v56 = vpop.f32.mrf.mxu2  ;;  %v654_v57 = vadd.f32 %v653_v45, %v613_v55 }
  0xe8   : > { %v656_v62 = vpop.f32.mrf.mxu3 }
  0xe9   : > { %678 = vst.msk [vmem:[%s1563_s6] sm:$0xff] %vm677_vm2, %v654_v57  ;;  %v574_v1 = vpop.f32.mrf.mxu1 }
  0xea   : > { %v575_v2 = vadd.f32 %v574_v1, %v533_v60 }
  0xec   : > { %v616_v3 = vadd.f32 %v615_v56, %v575_v2 }
  0xee   : > { %v657_v12 = vadd.f32 %v656_v62, %v616_v3  ;;  %v536_v13 = vpop.f32.mrf.mxu0 }
  0xef   : > { %v618_v9 = vpop.f32.mrf.mxu2 }
  0xf0   : > { %679 = vst.msk [vmem:[%s1563_s6 + $0x8] sm:$0xff] %vm677_vm2, %v657_v12  ;;  %v659_v23 = vpop.f32.mrf.mxu3 }
  0xf1   : > { %v577_v25 = vpop.f32.mrf.mxu1 }
  0xf2   : > { %v578_v27 = vadd.f32 %v577_v25, %v536_v13 }
  0xf4   : > { %v619_v39 = vadd.f32 %v618_v9, %v578_v27 }
  0xf6   : > { %v660_v54 = vadd.f32 %v659_v23, %v619_v39  ;;  %v539_v61 = vpop.f32.mrf.mxu0 }
  0xf7   : > { %v621_v43 = vpop.f32.mrf.mxu2 }
  0xf8   : > { %680 = vst.msk [vmem:[%s1563_s6 + $0x10] sm:$0xff] %vm677_vm2, %v660_v54  ;;  %v662_v7 = vpop.f32.mrf.mxu3 }
  0xf9   : > { %v580_v22 = vpop.f32.mrf.mxu1 }
  0xfa   : > { %v581_v30 = vadd.f32 %v580_v22, %v539_v61 }
  0xfc   : > { %v622_v32 = vadd.f32 %v621_v43, %v581_v30 }
  0xfe   : > { %v663_v38 = vadd.f32 %v662_v7, %v622_v32  ;;  %v542_v40 = vpop.f32.mrf.mxu0 }
  0xff   : > { %v624_v37 = vpop.f32.mrf.mxu2 }
 0x100   : > { %681 = vst.msk [vmem:[%s1563_s6 + $0x18] sm:$0xff] %vm677_vm2, %v663_v38  ;;  %v665_v41 = vpop.f32.mrf.mxu3 }
 0x101   : > { %v583_v42 = vpop.f32.mrf.mxu1 }
 0x102   : > { %v584_v46 = vadd.f32 %v583_v42, %v542_v40 }
 0x104   : > { %v625_v47 = vadd.f32 %v624_v37, %v584_v46 }
 0x106   : > { %v666_v50 = vadd.f32 %v665_v41, %v625_v47  ;;  %v545_v52 = vpop.f32.mrf.mxu0 }
 0x107   : > { %v627_v49 = vpop.f32.mrf.mxu2 }
 0x108   : > { %682 = vst.msk [vmem:[%s1563_s6 + $0x20] sm:$0xff] %vm677_vm2, %v666_v50  ;;  %v668_v53 = vpop.f32.mrf.mxu3 }
 0x109   : > { %v586_v58 = vpop.f32.mrf.mxu1 }
 0x10a   : > { %v587_v36 = vadd.f32 %v586_v58, %v545_v52 }
 0x10c   : > { %v628_v59 = vadd.f32 %v627_v49, %v587_v36 }
 0x10e   : > { %v669_v63 = vadd.f32 %v668_v53, %v628_v59  ;;  %v548_v0 = vpop.f32.mrf.mxu0 }
 0x10f   : > { %v630_v4 = vpop.f32.mrf.mxu2 }
 0x110   : > { %683 = vst.msk [vmem:[%s1563_s6 + $0x28] sm:$0xff] %vm677_vm2, %v669_v63  ;;  %v671_v6 = vpop.f32.mrf.mxu3 }
 0x111   : > { %v589_v5 = vpop.f32.mrf.mxu1 }
 0x112   : > { %v590_v8 = vadd.f32 %v589_v5, %v548_v0 }
 0x114   : > { %v631_v10 = vadd.f32 %v630_v4, %v590_v8 }
 0x116   : > { %v672_v11 = vadd.f32 %v671_v6, %v631_v10  ;;  %v551_v14 = vpop.f32.mrf.mxu0 }
 0x117   : > { %v633_v17 = vpop.f32.mrf.mxu2 }
 0x118   : > { %684 = vst.msk [vmem:[%s1563_s6 + $0x30] sm:$0xff] %vm677_vm2, %v672_v11  ;;  %v674_v21 = vpop.f32.mrf.mxu3 }
 0x119   : > { %v592_v16 = vpop.f32.mrf.mxu1 }
 0x11a   : > { %v593_v20 = vadd.f32 %v592_v16, %v551_v14 }
 0x11c   : > { %v634_v24 = vadd.f32 %v633_v17, %v593_v20 }
 0x11e   : > { %v675_v28 = vadd.f32 %v674_v21, %v634_v24 }
 0x120   : > { %685 = vst.msk [vmem:[%s1563_s6 + $0x38] sm:$0xff] %vm677_vm2, %v675_v28 }
 0x121 PF: > { %p805_p4 = scmp.ge.s32.totalorder %s903_s18, 2  ;;  %s719_s25 = sand.u32 1, %s891_s15  }
 0x122   : > { %s720_s11 = scalar_lea.sflag [#allocation3], %s719_s25 }
 0x123   : > { %p802_p5 = pnand %p805_p4, %p973_p6 }
 0x125   : > { %p803_p7 = pneg %p802_p5 }
 0x127   : > { %886 = dma.done.wait (%p803_p7), %s720_s11, 16  }
 0x128   : > { %888 = vsyncadd (%p803_p7), %s720_s11, 4294967280  ;;  %p15_p8 = scmp.ge.s32.totalorder %s956_s21, 4   ;;  %s1605_s15 = smov %s895_s16 }
 0x129   : > { %s1606_s16 = smov %s899_s17  ;;  %s1607_s17 = smov %s967_s24 }
 0x12a   : > { %s1608_s18 = smov %s956_s21  ;;  %17 = sbr.rel (!%p15_p8) target bundleno = 3 (0x3), region = 79 }
 0x12f   :  { %733 = vsyncpa [#allocation3], 1 }
 0x130   :  { %735 = vsyncpa [#allocation3 + $0x1], 1 }

</bundles_post_ra>
